<compile_context>
chip_gen: v5e
topology: v5e:2x2
jax: 0.10.0
libtpu: 0.0.40
codegen_flags: <defaults>
</compile_context>

<pallas_src>
import functools

import jax
import jax.numpy as jnp
from jax.experimental import pallas as pl
from jax.experimental.pallas import tpu as pltpu


def _round_up(x, m):
    return ((x + m - 1) // m) * m


def _ffc_kernel(x_ref, w1_ref, b1_ref, w2_ref, b2_ref, w3_ref, b3_ref, out_ref):
    # fc1 + relu
    h1 = jnp.dot(x_ref[...], w1_ref[...], preferred_element_type=jnp.float32)
    h1 = jnp.maximum(h1 + b1_ref[...], 0.0)
    # dropout -> identity (eval mode)
    # fc2 + relu
    h2 = jnp.dot(h1, w2_ref[...], preferred_element_type=jnp.float32)
    h2 = jnp.maximum(h2 + b2_ref[...], 0.0)
    # dropout -> identity (eval mode)
    # fused heads: (TB, H) @ (H, 2) + (1, 2) -> (TB, 2)  [col 0 = mean, col 1 = log_var]
    out_ref[...] = (
        jnp.dot(h2, w3_ref[...], preferred_element_type=jnp.float32) + b3_ref[...]
    )


def ffc_regression_parkinsons(x, fused_params, *, block_b=256):
    """Forward pass.

    x            : (B, input_size) float32
    fused_params : dict with zero-padded, head-fused weights (see fuse_and_pad_params)
    Returns (mean, log_var), each (B, 1) float32.
    """
    w1 = fused_params["w1"]   # (F, H)
    b1 = fused_params["b1"]   # (1, H)
    w2 = fused_params["w2"]   # (H, H)
    b2 = fused_params["b2"]   # (1, H)
    w3 = fused_params["w3"]   # (H, 2)
    b3 = fused_params["b3"]   # (1, 2)

    B, F = x.shape
    H = w1.shape[1]

    # Batch tile: multiple of 8 (sublanes), capped at block_b.
    tb = min(_round_up(block_b, 8), _round_up(B, 8))
    b_pad = _round_up(B, tb)
    if b_pad != B:
        x = jnp.pad(x, ((0, b_pad - B), (0, 0)))
    grid = (b_pad // tb,)

    param_bytes = sum(int(p.size) * p.dtype.itemsize
                      for p in (w1, b1, w2, b2, w3, b3))
    cost = pl.CostEstimate(
        flops=2 * b_pad * (F * H + H * H + H * 2),
        transcendentals=0,
        bytes_accessed=param_bytes + b_pad * F * 4 + b_pad * 2 * 4,
    )

    out = pl.pallas_call(
        _ffc_kernel,
        out_shape=jax.ShapeDtypeStruct((b_pad, 2), jnp.float32),
        grid=grid,
        in_specs=[
            pl.BlockSpec((tb, F), lambda i: (i, 0)),   # x: tiled over batch
            pl.BlockSpec((F, H), lambda i: (0, 0)),    # w1: resident
            pl.BlockSpec((1, H), lambda i: (0, 0)),    # b1
            pl.BlockSpec((H, H), lambda i: (0, 0)),    # w2
            pl.BlockSpec((1, H), lambda i: (0, 0)),    # b2
            pl.BlockSpec((H, 2), lambda i: (0, 0)),    # fused head weight
            pl.BlockSpec((1, 2), lambda i: (0, 0)),    # fused head bias
        ],
        out_specs=pl.BlockSpec((tb, 2), lambda i: (i, 0)),
        compiler_params=pltpu.CompilerParams(
            dimension_semantics=("parallel",),
        ),
        cost_estimate=cost,
    )(x, w1, b1, w2, b2, w3, b3)

    mean = out[:B, 0:1]
    log_var = out[:B, 1:2]
    return mean, log_var


def init_params(key, input_size, hidden=400):
    """Deterministic init mimicking nn.Linear default (uniform +/- 1/sqrt(fan_in)).
    Weights are stored as (in, out) — transposed relative to PyTorch's (out, in)."""
    ks = jax.random.split(key, 8)

    def linear(kw, kb, fan_in, fan_out):
        bound = 1.0 / jnp.sqrt(fan_in)
        w = jax.random.uniform(kw, (fan_in, fan_out), jnp.float32, -bound, bound)
        b = jax.random.uniform(kb, (1, fan_out), jnp.float32, -bound, bound)
        return w, b

    w1, b1 = linear(ks[0], ks[1], input_size, hidden)
    w2, b2 = linear(ks[2], ks[3], hidden, hidden)
    w3m, b3m = linear(ks[4], ks[5], hidden, 1)
    w3v, b3v = linear(ks[6], ks[7], hidden, 1)
    return {"w1": w1, "b1": b1, "w2": w2, "b2": b2,
            "w3m": w3m, "b3m": b3m, "w3v": w3v, "b3v": b3v}


def fuse_and_pad_params(p, hidden_pad=512):
    """Fuse the two 1-wide heads into one (H, 2) matmul and zero-pad the hidden
    dim to a multiple of 128 lanes.  Exactly math-preserving (relu(0) == 0 keeps
    padded channels inert; padded head rows are zero)."""
    h = p["w2"].shape[0]
    assert hidden_pad >= h and hidden_pad % 128 == 0
    dp = hidden_pad - h

    w1 = jnp.pad(p["w1"], ((0, 0), (0, dp)))
    b1 = jnp.pad(p["b1"], ((0, 0), (0, dp)))
    w2 = jnp.pad(p["w2"], ((0, dp), (0, dp)))
    b2 = jnp.pad(p["b2"], ((0, 0), (0, dp)))
    w3 = jnp.pad(jnp.concatenate([p["w3m"], p["w3v"]], axis=1), ((0, dp), (0, 0)))
    b3 = jnp.concatenate([p["b3m"], p["b3v"]], axis=1)
    return {"w1": w1, "b1": b1, "w2": w2, "b2": b2, "w3": w3, "b3": b3}


def reference(x, p):
    """Pure-JAX reference using the original (unpadded, unfused) parameters."""
    h1 = jnp.maximum(x @ p["w1"] + p["b1"], 0.0)
    h2 = jnp.maximum(h1 @ p["w2"] + p["b2"], 0.0)
    return h2 @ p["w3m"] + p["b3m"], h2 @ p["w3v"] + p["b3v"]


if __name__ == "__main__":
    key = jax.random.PRNGKey(0)
    k_x, k_p = jax.random.split(key)

    batch = 8
    input_size = 16  # Parkinsons telemonitoring feature count (small example)

    x = jax.random.normal(k_x, (batch, input_size), jnp.float32)
    params = init_params(k_p, input_size)
    fused = fuse_and_pad_params(params, hidden_pad=512)

    run = jax.jit(functools.partial(ffc_regression_parkinsons, block_b=256))
    mean, log_var = run(x, fused)
    jax.block_until_ready((mean, log_var))

    # sanity check against pure-JAX reference (original 400-wide params)
    ref_mean, ref_logvar = reference(x, params)
    assert mean.shape == (batch, 1) and log_var.shape == (batch, 1)
    assert jnp.allclose(mean, ref_mean, atol=1e-4, rtol=1e-4)
    assert jnp.allclose(log_var, ref_logvar, atol=1e-4, rtol=1e-4)

    print("KERNEL_OK")
</pallas_src>

<mosaic_0001>
module attributes {stable_mosaic.version = 11 : i64} {
  func.func @_ffc_kernel(%arg0: i32, %arg1: memref<8x16xf32, #tpu.memory_space<vmem>>, %arg2: memref<16x512xf32, #tpu.memory_space<vmem>>, %arg3: memref<1x512xf32, #tpu.memory_space<vmem>>, %arg4: memref<512x512xf32, #tpu.memory_space<vmem>>, %arg5: memref<1x512xf32, #tpu.memory_space<vmem>>, %arg6: memref<512x2xf32, #tpu.memory_space<vmem>>, %arg7: memref<1x2xf32, #tpu.memory_space<vmem>>, %arg8: memref<8x2xf32, #tpu.memory_space<vmem>>) attributes {dimension_semantics = [#tpu.dimension_semantics<parallel>], iteration_bounds = array<i64: 1>, scalar_prefetch = 0 : i64, scratch_operands = 0 : i64, tpu.core_type = #tpu.core_type<tc>, window_params = [{transform_indices = @transform_0, window_bounds = array<i64: 8, 16>}, {pipeline_mode = #tpu.pipeline_mode<synchronous>, transform_indices = @transform_1, window_bounds = array<i64: 16, 512>}, {pipeline_mode = #tpu.pipeline_mode<synchronous>, transform_indices = @transform_2, window_bounds = array<i64: 1, 512>}, {pipeline_mode = #tpu.pipeline_mode<synchronous>, transform_indices = @transform_3, window_bounds = array<i64: 512, 512>}, {pipeline_mode = #tpu.pipeline_mode<synchronous>, transform_indices = @transform_4, window_bounds = array<i64: 1, 512>}, {pipeline_mode = #tpu.pipeline_mode<synchronous>, transform_indices = @transform_5, window_bounds = array<i64: 512, 2>}, {pipeline_mode = #tpu.pipeline_mode<synchronous>, transform_indices = @transform_6, window_bounds = array<i64: 1, 2>}, {transform_indices = @transform_7, window_bounds = array<i64: 8, 2>}]} {
    %c0 = arith.constant 0 : index
    %c0_0 = arith.constant 0 : index
    %0 = vector.load %arg1[%c0, %c0_0] : memref<8x16xf32, #tpu.memory_space<vmem>>, vector<8x16xf32>
    %c0_1 = arith.constant 0 : index
    %c0_2 = arith.constant 0 : index
    %1 = vector.load %arg2[%c0_1, %c0_2] : memref<16x512xf32, #tpu.memory_space<vmem>>, vector<16x512xf32>
    %cst = arith.constant dense<0.000000e+00> : vector<8x512xf32>
    %2 = tpu.matmul %0, %1, %cst {dimension_numbers = #tpu.dot_dimension_numbers<[1], [0], [0], [1], [0, 0, 1, 1], [], []>} : vector<8x16xf32>, vector<16x512xf32>, vector<8x512xf32> -> vector<8x512xf32>
    %c0_3 = arith.constant 0 : index
    %c0_4 = arith.constant 0 : index
    %3 = vector.load %arg3[%c0_3, %c0_4] : memref<1x512xf32, #tpu.memory_space<vmem>>, vector<1x512xf32>
    %4 = vector.broadcast %3 : vector<1x512xf32> to vector<8x512xf32>
    %5 = arith.addf %2, %4 : vector<8x512xf32>
    %cst_5 = arith.constant 0.000000e+00 : f32
    %6 = vector.broadcast %cst_5 : f32 to vector<8x512xf32>
    %7 = arith.maximumf %5, %6 : vector<8x512xf32>
    %c0_6 = arith.constant 0 : index
    %c0_7 = arith.constant 0 : index
    %8 = vector.load %arg4[%c0_6, %c0_7] : memref<512x512xf32, #tpu.memory_space<vmem>>, vector<512x512xf32>
    %cst_8 = arith.constant dense<0.000000e+00> : vector<8x512xf32>
    %9 = tpu.matmul %7, %8, %cst_8 {dimension_numbers = #tpu.dot_dimension_numbers<[1], [0], [0], [1], [0, 0, 1, 1], [], []>} : vector<8x512xf32>, vector<512x512xf32>, vector<8x512xf32> -> vector<8x512xf32>
    %c0_9 = arith.constant 0 : index
    %c0_10 = arith.constant 0 : index
    %10 = vector.load %arg5[%c0_9, %c0_10] : memref<1x512xf32, #tpu.memory_space<vmem>>, vector<1x512xf32>
    %11 = vector.broadcast %10 : vector<1x512xf32> to vector<8x512xf32>
    %12 = arith.addf %9, %11 : vector<8x512xf32>
    %cst_11 = arith.constant 0.000000e+00 : f32
    %13 = vector.broadcast %cst_11 : f32 to vector<8x512xf32>
    %14 = arith.maximumf %12, %13 : vector<8x512xf32>
    %c0_12 = arith.constant 0 : index
    %c0_13 = arith.constant 0 : index
    %15 = vector.load %arg6[%c0_12, %c0_13] : memref<512x2xf32, #tpu.memory_space<vmem>>, vector<512x2xf32>
    %cst_14 = arith.constant dense<0.000000e+00> : vector<8x2xf32>
    %16 = tpu.matmul %14, %15, %cst_14 {dimension_numbers = #tpu.dot_dimension_numbers<[1], [0], [0], [1], [0, 0, 1, 1], [], []>} : vector<8x512xf32>, vector<512x2xf32>, vector<8x2xf32> -> vector<8x2xf32>
    %c0_15 = arith.constant 0 : index
    %c0_16 = arith.constant 0 : index
    %17 = vector.load %arg7[%c0_15, %c0_16] : memref<1x2xf32, #tpu.memory_space<vmem>>, vector<1x2xf32>
    %18 = vector.broadcast %17 : vector<1x2xf32> to vector<8x2xf32>
    %19 = arith.addf %16, %18 : vector<8x2xf32>
    %c0_17 = arith.constant 0 : index
    %c0_18 = arith.constant 0 : index
    %20 = vector.load %arg8[%c0_17, %c0_18] : memref<8x2xf32, #tpu.memory_space<vmem>>, vector<8x2xf32>
    tpu.vector_store %arg8[%c0_17, %c0_18], %19 {strides = array<i32>} : memref<8x2xf32, #tpu.memory_space<vmem>>, vector<8x2xf32>,
    return
  }
  func.func @transform_0(%arg0: i32) -> (i32, i32) {
    %c0_i32 = arith.constant 0 : i32
    %c0_i32_0 = arith.constant 0 : i32
    return %arg0, %c0_i32 : i32, i32
  }
  func.func @transform_1(%arg0: i32) -> (i32, i32) {
    %c0_i32 = arith.constant 0 : i32
    %c0_i32_0 = arith.constant 0 : i32
    %c0_i32_1 = arith.constant 0 : i32
    return %c0_i32, %c0_i32_0 : i32, i32
  }
  func.func @transform_2(%arg0: i32) -> (i32, i32) {
    %c0_i32 = arith.constant 0 : i32
    %c0_i32_0 = arith.constant 0 : i32
    %c0_i32_1 = arith.constant 0 : i32
    return %c0_i32, %c0_i32_0 : i32, i32
  }
  func.func @transform_3(%arg0: i32) -> (i32, i32) {
    %c0_i32 = arith.constant 0 : i32
    %c0_i32_0 = arith.constant 0 : i32
    %c0_i32_1 = arith.constant 0 : i32
    return %c0_i32, %c0_i32_0 : i32, i32
  }
  func.func @transform_4(%arg0: i32) -> (i32, i32) {
    %c0_i32 = arith.constant 0 : i32
    %c0_i32_0 = arith.constant 0 : i32
    %c0_i32_1 = arith.constant 0 : i32
    return %c0_i32, %c0_i32_0 : i32, i32
  }
  func.func @transform_5(%arg0: i32) -> (i32, i32) {
    %c0_i32 = arith.constant 0 : i32
    %c0_i32_0 = arith.constant 0 : i32
    %c0_i32_1 = arith.constant 0 : i32
    return %c0_i32, %c0_i32_0 : i32, i32
  }
  func.func @transform_6(%arg0: i32) -> (i32, i32) {
    %c0_i32 = arith.constant 0 : i32
    %c0_i32_0 = arith.constant 0 : i32
    %c0_i32_1 = arith.constant 0 : i32
    return %c0_i32, %c0_i32_0 : i32, i32
  }
  func.func @transform_7(%arg0: i32) -> (i32, i32) {
    %c0_i32 = arith.constant 0 : i32
    %c0_i32_0 = arith.constant 0 : i32
    return %arg0, %c0_i32 : i32, i32
  }
}

</mosaic_0001>

<bundles_post_ra>
// kernel: ffc_regression_parkinsons.1
= control target key start
LH: loop header
LB: loop body
LE: loop exit
PB: predicated region body
PF: predicated region fallthrough
CT: control target
= control target key end

     0   :  { %12 = vsyncpa [#allocation3], 0  ;;  %s928_s27 = smov [#allocation2]   ;;  %s929_s29 = smov 512   ;;  %s1235_s0 = inlined_call_operand.vmem [shape: f32[8,16], index: 0, kind: input, shape index: {}]   ;;  %s1236_s1 = inlined_call_operand.vmem [shape: f32[16,512], index: 1, kind: input, shape index: {}]   ;;  %s1237_s2 = inlined_call_operand.vmem [shape: f32[1,512], index: 2, kind: input, shape index: {}]   ;;  %s1238_s3 = inlined_call_operand.hbm [shape: f32[512,512], index: 3, kind: input, shape index: {}]   ;;  %s1239_s4 = inlined_call_operand.vmem [shape: f32[1,512], index: 4, kind: input, shape index: {}]   ;;  %s1240_s5 = inlined_call_operand.vmem [shape: f32[512,2], index: 5, kind: input, shape index: {}]   ;;  %s1241_s6 = inlined_call_operand.vmem [shape: f32[1,2], index: 6, kind: input, shape index: {}]   ;;  %s1242_s7 = inlined_call_operand.vmem [shape: f32[8,2], index: 7, kind: output, shape index: {}]  }
   0x1   :  { %s23_s26 = sshll.u32 %s1238_s3, 4  ;;  %s25_s28 = sshll.u32 %s928_s27, 4  ;;  %s24_s26 = int_to_ptr.hbm [resolvable:$true] %s23_s26  ;;  %s26_s28 = int_to_ptr.vmem [resolvable:$true] %s25_s28 }
   0x2   :  { %s930_s30 = smov 32  }
   0x3   :  { %31 = dma.hbm_to_vmem [thread:$0]  %s24_s26, 32768, %s26_s28, [#allocation3], %s929_s29, %s929_s29, %s930_s30  }
   0x4   :  { %926 = dma.done.wait [#allocation3], 32768  }
   0x5   :  { %927 = vsyncadd [#allocation3], 4294934528  ;;  %v47_v0 = vld [vmem:[%s1236_s1 + $0x20] sm:$0xff]  ;;  %v48_v1 = vld [vmem:[%s1236_s1 + $0x28] sm:$0xff]  ;;  %vm61_vm0 = vcmask 130048   ;;  %vm887_vm1 = vcmask 15360  }
   0x6   :  { %v49_v2 = vld [vmem:[%s1236_s1 + $0x30] sm:$0xff]  ;;  %79 = vmatpush.msra.mxu0 %v47_v0  ;;  %99 = vmatpush.msra.mxu1 %v48_v1  ;;  %v50_v3 = vld [vmem:[%s1236_s1 + $0x38] sm:$0xff]  ;;  %v43_v4 = vld [vmem:[%s1236_s1] sm:$0xff] }
   0x7   :  { %v44_v5 = vld [vmem:[%s1236_s1 + $0x8] sm:$0xff]  ;;  %119 = vmatpush.msra.mxu2 %v49_v2  ;;  %139 = vmatpush.msra.mxu3 %v50_v3  ;;  %v45_v6 = vld [vmem:[%s1236_s1 + $0x10] sm:$0xff]  ;;  %v46_v7 = vld [vmem:[%s1236_s1 + $0x18] sm:$0xff] }
   0x8   :  { %v42_v8 = vld [vmem:[%s1235_s0] sm:$0xff]  ;;  %80 = vmatpush.msra.mxu0 %v43_v4  ;;  %100 = vmatpush.msra.mxu1 %v44_v5 }
   0x9   :  { %120 = vmatpush.msra.mxu2 %v45_v6  ;;  %140 = vmatpush.msra.mxu3 %v46_v7  ;;  %v209_v9 = vld [vmem:[#allocation2 + $0x1e0] sm:$0xff]  ;;  %v210_v7 = vld [vmem:[#allocation2 + $0x1e8] sm:$0xff] }
   0xa   :  { %v273_v10 = vld [vmem:[#allocation2 + $0x3e0] sm:$0xff]  ;;  %894 = vmatmul.msk.f32.vlgmr.msra.gmra.mxu0 %vm61_vm0, %v42_v8  ;;  %895 = vmatmul.msk.f32.vlgmr.msra.gmra.mxu1 %vm61_vm0, %v42_v8 }
   0xb   :  { %v337_v11 = vld [vmem:[#allocation2 + $0x5e0] sm:$0xff]  ;;  %896 = vmatmul.msk.f32.vlgmr.msra.gmra.mxu2 %vm61_vm0, %v42_v8  ;;  %897 = vmatmul.msk.f32.vlgmr.msra.gmra.mxu3 %vm61_vm0, %v42_v8  ;;  %v274_v8 = vld [vmem:[#allocation2 + $0x3e8] sm:$0xff] }
   0xc   :  { %v205_v12 = vld [vmem:[#allocation2 + $0x1c0] sm:$0xff]  ;;  %415 = vmatpush.msrb.mxu0 %v209_v9  ;;  %435 = vmatpush.msrb.mxu1 %v273_v10 }
   0xd   :  { %v269_v13 = vld [vmem:[#allocation2 + $0x3c0] sm:$0xff]  ;;  %455 = vmatpush.msrb.mxu2 %v337_v11  ;;  %v206_v11 = vld [vmem:[#allocation2 + $0x1c8] sm:$0xff] }
   0xe   :  { %v401_v14 = vld [vmem:[#allocation2 + $0x7e0] sm:$0xff]  ;;  %416 = vmatpush.msrb.mxu0 %v205_v12  ;;  %436 = vmatpush.msrb.mxu1 %v269_v13  ;;  %v270_v12 = vld [vmem:[#allocation2 + $0x3c8] sm:$0xff] }
   0xf   :  { %v333_v15 = vld [vmem:[#allocation2 + $0x5c0] sm:$0xff]  ;;  %475 = vmatpush.msrb.mxu3 %v401_v14  ;;  %v338_v13 = vld [vmem:[#allocation2 + $0x5e8] sm:$0xff] }
  0x10   :  { %v397_v16 = vld [vmem:[#allocation2 + $0x7c0] sm:$0xff]  ;;  %456 = vmatpush.msrb.mxu2 %v333_v15  ;;  %v402_v14 = vld [vmem:[#allocation2 + $0x7e8] sm:$0xff] }
  0x11   :  { %v201_v17 = vld [vmem:[#allocation2 + $0x1a0] sm:$0xff]  ;;  %476 = vmatpush.msrb.mxu3 %v397_v16  ;;  %v202_v15 = vld [vmem:[#allocation2 + $0x1a8] sm:$0xff] }
  0x12   :  { %v265_v18 = vld [vmem:[#allocation2 + $0x3a0] sm:$0xff]  ;;  %417 = vmatpush.msrb.mxu0 %v201_v17  ;;  %v266_v16 = vld [vmem:[#allocation2 + $0x3a8] sm:$0xff] }
  0x13   :  { %v329_v19 = vld [vmem:[#allocation2 + $0x5a0] sm:$0xff]  ;;  %437 = vmatpush.msrb.mxu1 %v265_v18  ;;  %v334_v17 = vld [vmem:[#allocation2 + $0x5c8] sm:$0xff] }
  0x14   :  { %v393_v20 = vld [vmem:[#allocation2 + $0x7a0] sm:$0xff]  ;;  %457 = vmatpush.msrb.mxu2 %v329_v19  ;;  %v398_v18 = vld [vmem:[#allocation2 + $0x7c8] sm:$0xff] }
  0x15   :  { %v197_v21 = vld [vmem:[#allocation2 + $0x180] sm:$0xff]  ;;  %477 = vmatpush.msrb.mxu3 %v393_v20  ;;  %v198_v19 = vld [vmem:[#allocation2 + $0x188] sm:$0xff] }
  0x16   :  { %v261_v22 = vld [vmem:[#allocation2 + $0x380] sm:$0xff]  ;;  %418 = vmatpush.msrb.mxu0 %v197_v21  ;;  %v262_v20 = vld [vmem:[#allocation2 + $0x388] sm:$0xff] }
  0x17   :  { %v325_v23 = vld [vmem:[#allocation2 + $0x580] sm:$0xff]  ;;  %438 = vmatpush.msrb.mxu1 %v261_v22  ;;  %v330_v21 = vld [vmem:[#allocation2 + $0x5a8] sm:$0xff] }
  0x18   :  { %v389_v24 = vld [vmem:[#allocation2 + $0x780] sm:$0xff]  ;;  %458 = vmatpush.msrb.mxu2 %v325_v23  ;;  %v394_v22 = vld [vmem:[#allocation2 + $0x7a8] sm:$0xff] }
  0x19   :  { %v193_v25 = vld [vmem:[#allocation2 + $0x160] sm:$0xff]  ;;  %478 = vmatpush.msrb.mxu3 %v389_v24  ;;  %v194_v23 = vld [vmem:[#allocation2 + $0x168] sm:$0xff] }
  0x1a   :  { %v257_v26 = vld [vmem:[#allocation2 + $0x360] sm:$0xff]  ;;  %419 = vmatpush.msrb.mxu0 %v193_v25  ;;  %v258_v24 = vld [vmem:[#allocation2 + $0x368] sm:$0xff] }
  0x1b   :  { %v321_v27 = vld [vmem:[#allocation2 + $0x560] sm:$0xff]  ;;  %439 = vmatpush.msrb.mxu1 %v257_v26  ;;  %v326_v25 = vld [vmem:[#allocation2 + $0x588] sm:$0xff] }
  0x1c   :  { %v385_v28 = vld [vmem:[#allocation2 + $0x760] sm:$0xff]  ;;  %459 = vmatpush.msrb.mxu2 %v321_v27  ;;  %v390_v26 = vld [vmem:[#allocation2 + $0x788] sm:$0xff] }
  0x1d   :  { %v189_v29 = vld [vmem:[#allocation2 + $0x140] sm:$0xff]  ;;  %479 = vmatpush.msrb.mxu3 %v385_v28  ;;  %v190_v27 = vld [vmem:[#allocation2 + $0x148] sm:$0xff] }
  0x1e   :  { %v253_v30 = vld [vmem:[#allocation2 + $0x340] sm:$0xff]  ;;  %420 = vmatpush.msrb.mxu0 %v189_v29  ;;  %v254_v28 = vld [vmem:[#allocation2 + $0x348] sm:$0xff] }
  0x1f   :  { %v317_v31 = vld [vmem:[#allocation2 + $0x540] sm:$0xff]  ;;  %440 = vmatpush.msrb.mxu1 %v253_v30  ;;  %v322_v29 = vld [vmem:[#allocation2 + $0x568] sm:$0xff] }
  0x20   :  { %v381_v32 = vld [vmem:[#allocation2 + $0x740] sm:$0xff]  ;;  %460 = vmatpush.msrb.mxu2 %v317_v31  ;;  %v386_v30 = vld [vmem:[#allocation2 + $0x768] sm:$0xff] }
  0x21   :  { %v185_v33 = vld [vmem:[#allocation2 + $0x120] sm:$0xff]  ;;  %480 = vmatpush.msrb.mxu3 %v381_v32  ;;  %v186_v31 = vld [vmem:[#allocation2 + $0x128] sm:$0xff] }
  0x22   :  { %v249_v34 = vld [vmem:[#allocation2 + $0x320] sm:$0xff]  ;;  %421 = vmatpush.msrb.mxu0 %v185_v33  ;;  %v250_v32 = vld [vmem:[#allocation2 + $0x328] sm:$0xff] }
  0x23   :  { %v313_v35 = vld [vmem:[#allocation2 + $0x520] sm:$0xff]  ;;  %441 = vmatpush.msrb.mxu1 %v249_v34  ;;  %v318_v33 = vld [vmem:[#allocation2 + $0x548] sm:$0xff] }
  0x24   :  { %v377_v36 = vld [vmem:[#allocation2 + $0x720] sm:$0xff]  ;;  %461 = vmatpush.msrb.mxu2 %v313_v35  ;;  %v382_v34 = vld [vmem:[#allocation2 + $0x748] sm:$0xff] }
  0x25   :  { %v181_v37 = vld [vmem:[#allocation2 + $0x100] sm:$0xff]  ;;  %481 = vmatpush.msrb.mxu3 %v377_v36  ;;  %v182_v35 = vld [vmem:[#allocation2 + $0x108] sm:$0xff] }
  0x26   :  { %v245_v38 = vld [vmem:[#allocation2 + $0x300] sm:$0xff]  ;;  %422 = vmatpush.msrb.mxu0 %v181_v37  ;;  %v246_v36 = vld [vmem:[#allocation2 + $0x308] sm:$0xff] }
  0x27   :  { %v309_v39 = vld [vmem:[#allocation2 + $0x500] sm:$0xff]  ;;  %442 = vmatpush.msrb.mxu1 %v245_v38  ;;  %v314_v37 = vld [vmem:[#allocation2 + $0x528] sm:$0xff] }
  0x28   :  { %v373_v40 = vld [vmem:[#allocation2 + $0x700] sm:$0xff]  ;;  %462 = vmatpush.msrb.mxu2 %v309_v39  ;;  %v378_v38 = vld [vmem:[#allocation2 + $0x728] sm:$0xff] }
  0x29   :  { %v177_v41 = vld [vmem:[#allocation2 + $0xe0] sm:$0xff]  ;;  %482 = vmatpush.msrb.mxu3 %v373_v40  ;;  %v178_v39 = vld [vmem:[#allocation2 + $0xe8] sm:$0xff] }
  0x2a   :  { %v241_v42 = vld [vmem:[#allocation2 + $0x2e0] sm:$0xff]  ;;  %423 = vmatpush.msrb.mxu0 %v177_v41  ;;  %v242_v40 = vld [vmem:[#allocation2 + $0x2e8] sm:$0xff] }
  0x2b   :  { %v305_v43 = vld [vmem:[#allocation2 + $0x4e0] sm:$0xff]  ;;  %443 = vmatpush.msrb.mxu1 %v241_v42  ;;  %v310_v41 = vld [vmem:[#allocation2 + $0x508] sm:$0xff] }
  0x2c   :  { %v369_v44 = vld [vmem:[#allocation2 + $0x6e0] sm:$0xff]  ;;  %463 = vmatpush.msrb.mxu2 %v305_v43  ;;  %v374_v42 = vld [vmem:[#allocation2 + $0x708] sm:$0xff] }
  0x2d   :  { %v173_v45 = vld [vmem:[#allocation2 + $0xc0] sm:$0xff]  ;;  %483 = vmatpush.msrb.mxu3 %v369_v44  ;;  %v174_v43 = vld [vmem:[#allocation2 + $0xc8] sm:$0xff] }
  0x2e   :  { %v237_v46 = vld [vmem:[#allocation2 + $0x2c0] sm:$0xff]  ;;  %424 = vmatpush.msrb.mxu0 %v173_v45  ;;  %v238_v44 = vld [vmem:[#allocation2 + $0x2c8] sm:$0xff] }
  0x2f   :  { %v301_v47 = vld [vmem:[#allocation2 + $0x4c0] sm:$0xff]  ;;  %444 = vmatpush.msrb.mxu1 %v237_v46  ;;  %v306_v45 = vld [vmem:[#allocation2 + $0x4e8] sm:$0xff] }
  0x30   :  { %v365_v48 = vld [vmem:[#allocation2 + $0x6c0] sm:$0xff]  ;;  %464 = vmatpush.msrb.mxu2 %v301_v47  ;;  %v370_v46 = vld [vmem:[#allocation2 + $0x6e8] sm:$0xff] }
  0x31   :  { %v169_v49 = vld [vmem:[#allocation2 + $0xa0] sm:$0xff]  ;;  %484 = vmatpush.msrb.mxu3 %v365_v48  ;;  %v170_v47 = vld [vmem:[#allocation2 + $0xa8] sm:$0xff] }
  0x32   :  { %v233_v50 = vld [vmem:[#allocation2 + $0x2a0] sm:$0xff]  ;;  %425 = vmatpush.msrb.mxu0 %v169_v49  ;;  %v234_v48 = vld [vmem:[#allocation2 + $0x2a8] sm:$0xff] }
  0x33   :  { %v297_v51 = vld [vmem:[#allocation2 + $0x4a0] sm:$0xff]  ;;  %445 = vmatpush.msrb.mxu1 %v233_v50  ;;  %v302_v49 = vld [vmem:[#allocation2 + $0x4c8] sm:$0xff] }
  0x34   :  { %v361_v52 = vld [vmem:[#allocation2 + $0x6a0] sm:$0xff]  ;;  %465 = vmatpush.msrb.mxu2 %v297_v51  ;;  %v366_v50 = vld [vmem:[#allocation2 + $0x6c8] sm:$0xff] }
  0x35   :  { %v165_v53 = vld [vmem:[#allocation2 + $0x80] sm:$0xff]  ;;  %485 = vmatpush.msrb.mxu3 %v361_v52  ;;  %v166_v51 = vld [vmem:[#allocation2 + $0x88] sm:$0xff] }
  0x36   :  { %v229_v54 = vld [vmem:[#allocation2 + $0x280] sm:$0xff]  ;;  %426 = vmatpush.msrb.mxu0 %v165_v53  ;;  %v230_v52 = vld [vmem:[#allocation2 + $0x288] sm:$0xff] }
  0x37   :  { %v293_v55 = vld [vmem:[#allocation2 + $0x480] sm:$0xff]  ;;  %446 = vmatpush.msrb.mxu1 %v229_v54  ;;  %v162_v53 = vld [vmem:[#allocation2 + $0x68] sm:$0xff] }
  0x38   :  { %v357_v56 = vld [vmem:[#allocation2 + $0x680] sm:$0xff]  ;;  %466 = vmatpush.msrb.mxu2 %v293_v55  ;;  %v226_v54 = vld [vmem:[#allocation2 + $0x268] sm:$0xff] }
  0x39   :  { %v161_v57 = vld [vmem:[#allocation2 + $0x60] sm:$0xff]  ;;  %486 = vmatpush.msrb.mxu3 %v357_v56  ;;  %v158_v55 = vld [vmem:[#allocation2 + $0x48] sm:$0xff] }
  0x3a   :  { %v225_v58 = vld [vmem:[#allocation2 + $0x260] sm:$0xff]  ;;  %427 = vmatpush.msrb.mxu0 %v161_v57  ;;  %v222_v56 = vld [vmem:[#allocation2 + $0x248] sm:$0xff] }
  0x3b   :  { %v289_v59 = vld [vmem:[#allocation2 + $0x460] sm:$0xff]  ;;  %447 = vmatpush.msrb.mxu1 %v225_v58  ;;  %v298_v57 = vld [vmem:[#allocation2 + $0x4a8] sm:$0xff] }
  0x3c   :  { %v353_v60 = vld [vmem:[#allocation2 + $0x660] sm:$0xff]  ;;  %467 = vmatpush.msrb.mxu2 %v289_v59  ;;  %v362_v58 = vld [vmem:[#allocation2 + $0x6a8] sm:$0xff] }
  0x3d   :  { %v157_v61 = vld [vmem:[#allocation2 + $0x40] sm:$0xff]  ;;  %487 = vmatpush.msrb.mxu3 %v353_v60  ;;  %v154_v59 = vld [vmem:[#allocation2 + $0x28] sm:$0xff] }
  0x3e   :  { %v221_v62 = vld [vmem:[#allocation2 + $0x240] sm:$0xff]  ;;  %428 = vmatpush.msrb.mxu0 %v157_v61  ;;  %v218_v60 = vld [vmem:[#allocation2 + $0x228] sm:$0xff] }
  0x3f   :  { %v285_v63 = vld [vmem:[#allocation2 + $0x440] sm:$0xff]  ;;  %448 = vmatpush.msrb.mxu1 %v221_v62  ;;  %v294_v61 = vld [vmem:[#allocation2 + $0x488] sm:$0xff] }
  0x40   :  { %v349_v0 = vld [vmem:[#allocation2 + $0x640] sm:$0xff]  ;;  %468 = vmatpush.msrb.mxu2 %v285_v63  ;;  %v358_v62 = vld [vmem:[#allocation2 + $0x688] sm:$0xff] }
  0x41   :  { %v153_v1 = vld [vmem:[#allocation2 + $0x20] sm:$0xff]  ;;  %488 = vmatpush.msrb.mxu3 %v349_v0  ;;  %v150_v63 = vld [vmem:[#allocation2 + $0x8] sm:$0xff] }
  0x42   :  { %v217_v2 = vld [vmem:[#allocation2 + $0x220] sm:$0xff]  ;;  %429 = vmatpush.msrb.mxu0 %v153_v1  ;;  %v214_v0 = vld [vmem:[#allocation2 + $0x208] sm:$0xff] }
  0x43   :  { %v281_v3 = vld [vmem:[#allocation2 + $0x420] sm:$0xff]  ;;  %449 = vmatpush.msrb.mxu1 %v217_v2  ;;  %v290_v1 = vld [vmem:[#allocation2 + $0x468] sm:$0xff] }
  0x44   :  { %v345_v4 = vld [vmem:[#allocation2 + $0x620] sm:$0xff]  ;;  %469 = vmatpush.msrb.mxu2 %v281_v3  ;;  %v354_v2 = vld [vmem:[#allocation2 + $0x668] sm:$0xff] }
  0x45   :  { %v149_v5 = vld [vmem:[#allocation2] sm:$0xff]  ;;  %489 = vmatpush.msrb.mxu3 %v345_v4  ;;  %v286_v3 = vld [vmem:[#allocation2 + $0x448] sm:$0xff] }
  0x46   :  { %v213_v6 = vld [vmem:[#allocation2 + $0x200] sm:$0xff]  ;;  %430 = vmatpush.msrb.mxu0 %v149_v5  ;;  %v350_v4 = vld [vmem:[#allocation2 + $0x648] sm:$0xff] }
  0x47   :  { %v277_v9 = vld [vmem:[#allocation2 + $0x400] sm:$0xff]  ;;  %450 = vmatpush.msrb.mxu1 %v213_v6  ;;  %v282_v5 = vld [vmem:[#allocation2 + $0x428] sm:$0xff] }
  0x48   :  { %v341_v10 = vld [vmem:[#allocation2 + $0x600] sm:$0xff]  ;;  %495 = vmatpush.msra.mxu0 %v210_v7  ;;  %470 = vmatpush.msrb.mxu2 %v277_v9  ;;  %v346_v6 = vld [vmem:[#allocation2 + $0x628] sm:$0xff] }
  0x49   :  { %515 = vmatpush.msra.mxu1 %v274_v8  ;;  %490 = vmatpush.msrb.mxu3 %v341_v10  ;;  %v278_v7 = vld [vmem:[#allocation2 + $0x408] sm:$0xff]  ;;  %v51_v9 = vld [vmem:[%s1237_s2] sm:$0xf] }
  0x4a   :  { %496 = vmatpush.msra.mxu0 %v206_v11  ;;  %535 = vmatpush.msra.mxu2 %v338_v13  ;;  %v342_v8 = vld [vmem:[#allocation2 + $0x608] sm:$0xff]  ;;  %v53_v10 = vperm.slane %v51_v9, 0  ;;  %v54_v11 = vperm.slane %v51_v9, 1 }
  0x4b   :  { %516 = vmatpush.msra.mxu1 %v270_v12  ;;  %555 = vmatpush.msra.mxu3 %v402_v14 }
  0x4c   :  { %497 = vmatpush.msra.mxu0 %v202_v15  ;;  %536 = vmatpush.msra.mxu2 %v334_v17 }
  0x4d   :  { %517 = vmatpush.msra.mxu1 %v266_v16  ;;  %556 = vmatpush.msra.mxu3 %v398_v18  ;;  %v211_v18 = vld [vmem:[#allocation2 + $0x1f0] sm:$0xff] }
  0x4e   :  { %498 = vmatpush.msra.mxu0 %v198_v19  ;;  %537 = vmatpush.msra.mxu2 %v330_v21  ;;  %v275_v19 = vld [vmem:[#allocation2 + $0x3f0] sm:$0xff]  ;;  %v56_v21 = vperm.slane %v51_v9, 3 }
  0x4f   :  { %518 = vmatpush.msra.mxu1 %v262_v20  ;;  %557 = vmatpush.msra.mxu3 %v394_v22  ;;  %v55_v20 = vperm.slane %v51_v9, 2  ;;  %v207_v22 = vld [vmem:[#allocation2 + $0x1d0] sm:$0xff] }
  0x50   :  { %499 = vmatpush.msra.mxu0 %v194_v23  ;;  %538 = vmatpush.msra.mxu2 %v326_v25  ;;  %v271_v23 = vld [vmem:[#allocation2 + $0x3d0] sm:$0xff] }
  0x51   :  { %519 = vmatpush.msra.mxu1 %v258_v24  ;;  %558 = vmatpush.msra.mxu3 %v390_v26  ;;  %v203_v26 = vld [vmem:[#allocation2 + $0x1b0] sm:$0xff] }
  0x52   :  { %500 = vmatpush.msra.mxu0 %v190_v27  ;;  %539 = vmatpush.msra.mxu2 %v322_v29  ;;  %v267_v27 = vld [vmem:[#allocation2 + $0x3b0] sm:$0xff] }
  0x53   :  { %520 = vmatpush.msra.mxu1 %v254_v28  ;;  %559 = vmatpush.msra.mxu3 %v386_v30  ;;  %v223_v9 = vld [vmem:[#allocation2 + $0x250] sm:$0xff] }
  0x54   :  { %501 = vmatpush.msra.mxu0 %v186_v31  ;;  %540 = vmatpush.msra.mxu2 %v318_v33  ;;  %v263_v33 = vld [vmem:[#allocation2 + $0x390] sm:$0xff] }
  0x55   :  { %521 = vmatpush.msra.mxu1 %v250_v32  ;;  %560 = vmatpush.msra.mxu3 %v382_v34  ;;  %v199_v32 = vld [vmem:[#allocation2 + $0x190] sm:$0xff] }
  0x56   :  { %502 = vmatpush.msra.mxu0 %v182_v35  ;;  %541 = vmatpush.msra.mxu2 %v314_v37  ;;  %v339_v34 = vld [vmem:[#allocation2 + $0x5f0] sm:$0xff] }
  0x57   :  { %522 = vmatpush.msra.mxu1 %v246_v36  ;;  %561 = vmatpush.msra.mxu3 %v378_v38  ;;  %v403_v35 = vld [vmem:[#allocation2 + $0x7f0] sm:$0xff] }
  0x58   :  { %503 = vmatpush.msra.mxu0 %v178_v39  ;;  %542 = vmatpush.msra.mxu2 %v310_v41  ;;  %v259_v36 = vld [vmem:[#allocation2 + $0x370] sm:$0xff] }
  0x59   :  { %523 = vmatpush.msra.mxu1 %v242_v40  ;;  %562 = vmatpush.msra.mxu3 %v374_v42  ;;  %v195_v37 = vld [vmem:[#allocation2 + $0x170] sm:$0xff] }
  0x5a   :  { %504 = vmatpush.msra.mxu0 %v174_v43  ;;  %543 = vmatpush.msra.mxu2 %v306_v45  ;;  %v335_v38 = vld [vmem:[#allocation2 + $0x5d0] sm:$0xff] }
  0x5b   :  { %524 = vmatpush.msra.mxu1 %v238_v44  ;;  %563 = vmatpush.msra.mxu3 %v370_v46  ;;  %v399_v39 = vld [vmem:[#allocation2 + $0x7d0] sm:$0xff] }
  0x5c   :  { %505 = vmatpush.msra.mxu0 %v170_v47  ;;  %544 = vmatpush.msra.mxu2 %v302_v49  ;;  %v191_v40 = vld [vmem:[#allocation2 + $0x150] sm:$0xff] }
  0x5d   :  { %525 = vmatpush.msra.mxu1 %v234_v48  ;;  %564 = vmatpush.msra.mxu3 %v366_v50  ;;  %v255_v41 = vld [vmem:[#allocation2 + $0x350] sm:$0xff] }
  0x5e   :  { %506 = vmatpush.msra.mxu0 %v166_v51  ;;  %545 = vmatpush.msra.mxu2 %v298_v57  ;;  %v331_v42 = vld [vmem:[#allocation2 + $0x5b0] sm:$0xff] }
  0x5f   :  { %526 = vmatpush.msra.mxu1 %v230_v52  ;;  %565 = vmatpush.msra.mxu3 %v362_v58  ;;  %v395_v43 = vld [vmem:[#allocation2 + $0x7b0] sm:$0xff] }
  0x60   :  { %507 = vmatpush.msra.mxu0 %v162_v53  ;;  %546 = vmatpush.msra.mxu2 %v294_v61  ;;  %v187_v44 = vld [vmem:[#allocation2 + $0x130] sm:$0xff] }
  0x61   :  { %527 = vmatpush.msra.mxu1 %v226_v54  ;;  %566 = vmatpush.msra.mxu3 %v358_v62  ;;  %v251_v45 = vld [vmem:[#allocation2 + $0x330] sm:$0xff] }
  0x62   :  { %508 = vmatpush.msra.mxu0 %v158_v55  ;;  %547 = vmatpush.msra.mxu2 %v290_v1  ;;  %v327_v46 = vld [vmem:[#allocation2 + $0x590] sm:$0xff] }
  0x63   :  { %528 = vmatpush.msra.mxu1 %v222_v56  ;;  %567 = vmatpush.msra.mxu3 %v354_v2  ;;  %v391_v47 = vld [vmem:[#allocation2 + $0x790] sm:$0xff] }
  0x64   :  { %509 = vmatpush.msra.mxu0 %v154_v59  ;;  %548 = vmatpush.msra.mxu2 %v286_v3  ;;  %v183_v48 = vld [vmem:[#allocation2 + $0x110] sm:$0xff] }
  0x65   :  { %529 = vmatpush.msra.mxu1 %v218_v60  ;;  %568 = vmatpush.msra.mxu3 %v350_v4  ;;  %v247_v49 = vld [vmem:[#allocation2 + $0x310] sm:$0xff] }
  0x66   :  { %510 = vmatpush.msra.mxu0 %v150_v63  ;;  %549 = vmatpush.msra.mxu2 %v282_v5  ;;  %v323_v50 = vld [vmem:[#allocation2 + $0x570] sm:$0xff] }
  0x67   :  { %530 = vmatpush.msra.mxu1 %v214_v0  ;;  %569 = vmatpush.msra.mxu3 %v346_v6  ;;  %v387_v51 = vld [vmem:[#allocation2 + $0x770] sm:$0xff] }
  0x68   :  { %550 = vmatpush.msra.mxu2 %v278_v7  ;;  %v179_v52 = vld [vmem:[#allocation2 + $0xf0] sm:$0xff] }
  0x69   :  { %570 = vmatpush.msra.mxu3 %v342_v8  ;;  %v243_v53 = vld [vmem:[#allocation2 + $0x2f0] sm:$0xff] }
  0x6a   :  { %v319_v54 = vld [vmem:[#allocation2 + $0x550] sm:$0xff] }
  0x6b   :  { %v383_v55 = vld [vmem:[#allocation2 + $0x750] sm:$0xff] }
  0x6c   :  { %v175_v56 = vld [vmem:[#allocation2 + $0xd0] sm:$0xff] }
  0x6d   :  { %v239_v57 = vld [vmem:[#allocation2 + $0x2d0] sm:$0xff] }
  0x6e   :  { %v315_v58 = vld [vmem:[#allocation2 + $0x530] sm:$0xff] }
  0x6f   :  { %v379_v59 = vld [vmem:[#allocation2 + $0x730] sm:$0xff] }
  0x70   :  { %v171_v60 = vld [vmem:[#allocation2 + $0xb0] sm:$0xff] }
  0x71   :  { %v235_v61 = vld [vmem:[#allocation2 + $0x2b0] sm:$0xff] }
  0x72   :  { %v311_v62 = vld [vmem:[#allocation2 + $0x510] sm:$0xff] }
  0x73   :  { %v375_v63 = vld [vmem:[#allocation2 + $0x710] sm:$0xff] }
  0x74   :  { %v167_v0 = vld [vmem:[#allocation2 + $0x90] sm:$0xff] }
  0x75   :  { %v231_v1 = vld [vmem:[#allocation2 + $0x290] sm:$0xff] }
  0x76   :  { %v307_v2 = vld [vmem:[#allocation2 + $0x4f0] sm:$0xff] }
  0x77   :  { %v371_v3 = vld [vmem:[#allocation2 + $0x6f0] sm:$0xff] }
  0x78   :  { %v163_v4 = vld [vmem:[#allocation2 + $0x70] sm:$0xff] }
  0x79   :  { %v227_v5 = vld [vmem:[#allocation2 + $0x270] sm:$0xff] }
  0x7a   :  { %v303_v6 = vld [vmem:[#allocation2 + $0x4d0] sm:$0xff] }
  0x7b   :  { %v367_v7 = vld [vmem:[#allocation2 + $0x6d0] sm:$0xff] }
  0x7c   :  { %v159_v8 = vld [vmem:[#allocation2 + $0x50] sm:$0xff] }
  0x87   :  { %v82_v12 = vpop.f32.mrf.mxu0  ;;  %v102_v13 = vpop.f32.mrf.mxu1 }
  0x88   :  { %v83_v14 = vadd.f32 %v82_v12, %v53_v10  ;;  %v103_v15 = vadd.f32 %v102_v13, %v54_v11  ;;  %v299_v10 = vld [vmem:[#allocation2 + $0x4b0] sm:$0xff] }
  0x89   :  { %v363_v11 = vld [vmem:[#allocation2 + $0x6b0] sm:$0xff] }
  0x8a   :  { %v1004_v16 = vmax.f32 %v83_v14, 0.0  ;;  %v1006_v17 = vmax.f32 %v103_v15, 0.0  ;;  %v155_v12 = vld [vmem:[#allocation2 + $0x30] sm:$0xff] }
  0x8b   :  { %v219_v13 = vld [vmem:[#allocation2 + $0x230] sm:$0xff] }
  0x8c   :  { %431 = vmatmul.f32.vlgmr.msrb.gmra.mxu0 %v1004_v16  ;;  %451 = vmatmul.f32.vlgmr.msrb.gmra.mxu1 %v1006_v17  ;;  %v295_v14 = vld [vmem:[#allocation2 + $0x490] sm:$0xff] }
  0x8d   :  { %575 = vmatpush.msrb.mxu0 %v211_v18  ;;  %595 = vmatpush.msrb.mxu1 %v275_v19  ;;  %v359_v15 = vld [vmem:[#allocation2 + $0x690] sm:$0xff] }
  0x8e   :  { %v122_v24 = vpop.f32.mrf.mxu2  ;;  %v142_v25 = vpop.f32.mrf.mxu3  ;;  %v151_v18 = vld [vmem:[#allocation2 + $0x10] sm:$0xff] }
  0x8f   :  { %v123_v28 = vadd.f32 %v122_v24, %v55_v20  ;;  %v143_v29 = vadd.f32 %v142_v25, %v56_v21  ;;  %576 = vmatpush.msrb.mxu0 %v207_v22  ;;  %596 = vmatpush.msrb.mxu1 %v271_v23  ;;  %v215_v19 = vld [vmem:[#allocation2 + $0x210] sm:$0xff]  ;;  %v212_v22 = vld [vmem:[#allocation2 + $0x1f8] sm:$0xff] }
  0x90   :  { %v291_v20 = vld [vmem:[#allocation2 + $0x470] sm:$0xff]  ;;  %v276_v23 = vld [vmem:[#allocation2 + $0x3f8] sm:$0xff] }
  0x91   :  { %v1010_v30 = vmax.f32 %v123_v28, 0.0  ;;  %v1012_v31 = vmax.f32 %v143_v29, 0.0  ;;  %577 = vmatpush.msrb.mxu0 %v203_v26  ;;  %597 = vmatpush.msrb.mxu1 %v267_v27  ;;  %v355_v21 = vld [vmem:[#allocation2 + $0x670] sm:$0xff]  ;;  %v208_v26 = vld [vmem:[#allocation2 + $0x1d8] sm:$0xff] }
  0x92   :  { %v287_v24 = vld [vmem:[#allocation2 + $0x450] sm:$0xff]  ;;  %v272_v27 = vld [vmem:[#allocation2 + $0x3d8] sm:$0xff] }
  0x93   :  { %471 = vmatmul.f32.vlgmr.msrb.gmra.mxu2 %v1010_v30  ;;  %491 = vmatmul.f32.vlgmr.msrb.gmra.mxu3 %v1012_v31  ;;  %v351_v25 = vld [vmem:[#allocation2 + $0x650] sm:$0xff] }
  0x94   :  { %578 = vmatpush.msrb.mxu0 %v199_v32  ;;  %598 = vmatpush.msrb.mxu1 %v263_v33  ;;  %v283_v28 = vld [vmem:[#allocation2 + $0x430] sm:$0xff]  ;;  %v204_v32 = vld [vmem:[#allocation2 + $0x1b8] sm:$0xff] }
  0x95   :  { %615 = vmatpush.msrb.mxu2 %v339_v34  ;;  %635 = vmatpush.msrb.mxu3 %v403_v35  ;;  %v347_v29 = vld [vmem:[#allocation2 + $0x630] sm:$0xff]  ;;  %v268_v33 = vld [vmem:[#allocation2 + $0x3b8] sm:$0xff] }
  0x96   :  { %511 = vmatmul.f32.vlgmr.msra.gmra.mxu0 %v1004_v16  ;;  %599 = vmatpush.msrb.mxu1 %v259_v36  ;;  %v279_v34 = vld [vmem:[#allocation2 + $0x410] sm:$0xff]  ;;  %v200_v36 = vld [vmem:[#allocation2 + $0x198] sm:$0xff] }
  0x97   :  { %579 = vmatpush.msrb.mxu0 %v195_v37  ;;  %616 = vmatpush.msrb.mxu2 %v335_v38  ;;  %v343_v35 = vld [vmem:[#allocation2 + $0x610] sm:$0xff]  ;;  %v264_v37 = vld [vmem:[#allocation2 + $0x398] sm:$0xff] }
  0x98   :  { %636 = vmatpush.msrb.mxu3 %v399_v39  ;;  %531 = vmatmul.f32.vlgmr.msra.gmra.mxu1 %v1006_v17  ;;  %v340_v38 = vld [vmem:[#allocation2 + $0x5f8] sm:$0xff] }
  0x99   :  { %580 = vmatpush.msrb.mxu0 %v191_v40  ;;  %600 = vmatpush.msrb.mxu1 %v255_v41  ;;  %v404_v39 = vld [vmem:[#allocation2 + $0x7f8] sm:$0xff] }
  0x9a   :  { %617 = vmatpush.msrb.mxu2 %v331_v42  ;;  %637 = vmatpush.msrb.mxu3 %v395_v43  ;;  %v196_v40 = vld [vmem:[#allocation2 + $0x178] sm:$0xff] }
  0x9b   :  { %581 = vmatpush.msrb.mxu0 %v187_v44  ;;  %601 = vmatpush.msrb.mxu1 %v251_v45  ;;  %v260_v41 = vld [vmem:[#allocation2 + $0x378] sm:$0xff] }
  0x9c   :  { %618 = vmatpush.msrb.mxu2 %v327_v46  ;;  %638 = vmatpush.msrb.mxu3 %v391_v47  ;;  %v336_v42 = vld [vmem:[#allocation2 + $0x5d8] sm:$0xff] }
  0x9d   :  { %551 = vmatmul.f32.vlgmr.msra.gmra.mxu2 %v1010_v30  ;;  %571 = vmatmul.f32.vlgmr.msra.gmra.mxu3 %v1012_v31  ;;  %v400_v43 = vld [vmem:[#allocation2 + $0x7d8] sm:$0xff] }
  0x9e   :  { %582 = vmatpush.msrb.mxu0 %v183_v48  ;;  %602 = vmatpush.msrb.mxu1 %v247_v49  ;;  %v192_v44 = vld [vmem:[#allocation2 + $0x158] sm:$0xff] }
  0x9f   :  { %619 = vmatpush.msrb.mxu2 %v323_v50  ;;  %639 = vmatpush.msrb.mxu3 %v387_v51  ;;  %v256_v45 = vld [vmem:[#allocation2 + $0x358] sm:$0xff] }
  0xa0   :  { %583 = vmatpush.msrb.mxu0 %v179_v52  ;;  %603 = vmatpush.msrb.mxu1 %v243_v53  ;;  %v332_v46 = vld [vmem:[#allocation2 + $0x5b8] sm:$0xff] }
  0xa1   :  { %620 = vmatpush.msrb.mxu2 %v319_v54  ;;  %640 = vmatpush.msrb.mxu3 %v383_v55  ;;  %v396_v47 = vld [vmem:[#allocation2 + $0x7b8] sm:$0xff] }
  0xa2   :  { %584 = vmatpush.msrb.mxu0 %v175_v56  ;;  %604 = vmatpush.msrb.mxu1 %v239_v57  ;;  %v188_v48 = vld [vmem:[#allocation2 + $0x138] sm:$0xff] }
  0xa3   :  { %621 = vmatpush.msrb.mxu2 %v315_v58  ;;  %641 = vmatpush.msrb.mxu3 %v379_v59  ;;  %v252_v49 = vld [vmem:[#allocation2 + $0x338] sm:$0xff] }
  0xa4   :  { %585 = vmatpush.msrb.mxu0 %v171_v60  ;;  %605 = vmatpush.msrb.mxu1 %v235_v61  ;;  %v328_v50 = vld [vmem:[#allocation2 + $0x598] sm:$0xff] }
  0xa5   :  { %622 = vmatpush.msrb.mxu2 %v311_v62  ;;  %642 = vmatpush.msrb.mxu3 %v375_v63  ;;  %v392_v51 = vld [vmem:[#allocation2 + $0x798] sm:$0xff] }
  0xa6   :  { %586 = vmatpush.msrb.mxu0 %v167_v0  ;;  %606 = vmatpush.msrb.mxu1 %v231_v1  ;;  %v184_v52 = vld [vmem:[#allocation2 + $0x118] sm:$0xff] }
  0xa7   :  { %623 = vmatpush.msrb.mxu2 %v307_v2  ;;  %643 = vmatpush.msrb.mxu3 %v371_v3  ;;  %v248_v53 = vld [vmem:[#allocation2 + $0x318] sm:$0xff] }
  0xa8   :  { %587 = vmatpush.msrb.mxu0 %v163_v4  ;;  %607 = vmatpush.msrb.mxu1 %v227_v5  ;;  %v324_v54 = vld [vmem:[#allocation2 + $0x578] sm:$0xff] }
  0xa9   :  { %624 = vmatpush.msrb.mxu2 %v303_v6  ;;  %644 = vmatpush.msrb.mxu3 %v367_v7  ;;  %v388_v55 = vld [vmem:[#allocation2 + $0x778] sm:$0xff] }
  0xaa   :  { %588 = vmatpush.msrb.mxu0 %v159_v8  ;;  %608 = vmatpush.msrb.mxu1 %v223_v9  ;;  %v180_v56 = vld [vmem:[#allocation2 + $0xf8] sm:$0xff] }
  0xab   :  { %625 = vmatpush.msrb.mxu2 %v299_v10  ;;  %645 = vmatpush.msrb.mxu3 %v363_v11  ;;  %v244_v57 = vld [vmem:[#allocation2 + $0x2f8] sm:$0xff] }
  0xac   :  { %589 = vmatpush.msrb.mxu0 %v155_v12  ;;  %609 = vmatpush.msrb.mxu1 %v219_v13  ;;  %v320_v58 = vld [vmem:[#allocation2 + $0x558] sm:$0xff] }
  0xad   :  { %626 = vmatpush.msrb.mxu2 %v295_v14  ;;  %646 = vmatpush.msrb.mxu3 %v359_v15  ;;  %v384_v59 = vld [vmem:[#allocation2 + $0x758] sm:$0xff] }
  0xae   :  { %590 = vmatpush.msrb.mxu0 %v151_v18  ;;  %610 = vmatpush.msrb.mxu1 %v215_v19  ;;  %v176_v60 = vld [vmem:[#allocation2 + $0xd8] sm:$0xff] }
  0xaf   :  { %627 = vmatpush.msrb.mxu2 %v291_v20  ;;  %647 = vmatpush.msrb.mxu3 %v355_v21  ;;  %v240_v61 = vld [vmem:[#allocation2 + $0x2d8] sm:$0xff] }
  0xb0   :  { %591 = vmatmul.f32.vlgmr.msrb.gmra.mxu0 %v1004_v16  ;;  %611 = vmatmul.f32.vlgmr.msrb.gmra.mxu1 %v1006_v17  ;;  %v316_v62 = vld [vmem:[#allocation2 + $0x538] sm:$0xff] }
  0xb1   :  { %655 = vmatpush.msra.mxu0 %v212_v22  ;;  %675 = vmatpush.msra.mxu1 %v276_v23  ;;  %v380_v63 = vld [vmem:[#allocation2 + $0x738] sm:$0xff] }
  0xb2   :  { %628 = vmatpush.msrb.mxu2 %v287_v24  ;;  %648 = vmatpush.msrb.mxu3 %v351_v25  ;;  %v172_v0 = vld [vmem:[#allocation2 + $0xb8] sm:$0xff] }
  0xb3   :  { %656 = vmatpush.msra.mxu0 %v208_v26  ;;  %676 = vmatpush.msra.mxu1 %v272_v27  ;;  %v236_v1 = vld [vmem:[#allocation2 + $0x2b8] sm:$0xff] }
  0xb4   :  { %629 = vmatpush.msrb.mxu2 %v283_v28  ;;  %649 = vmatpush.msrb.mxu3 %v347_v29  ;;  %v312_v2 = vld [vmem:[#allocation2 + $0x518] sm:$0xff] }
  0xb5   :  { %657 = vmatpush.msra.mxu0 %v204_v32  ;;  %677 = vmatpush.msra.mxu1 %v268_v33  ;;  %v376_v3 = vld [vmem:[#allocation2 + $0x718] sm:$0xff] }
  0xb6   :  { %630 = vmatpush.msrb.mxu2 %v279_v34  ;;  %650 = vmatpush.msrb.mxu3 %v343_v35  ;;  %v168_v4 = vld [vmem:[#allocation2 + $0x98] sm:$0xff]  ;;  %v753_v34 = vld [vmem:[%s1240_s5 + $0x70] sm:$0xff] }
  0xb7   :  { %631 = vmatmul.f32.vlgmr.msrb.gmra.mxu2 %v1010_v30  ;;  %651 = vmatmul.f32.vlgmr.msrb.gmra.mxu3 %v1012_v31  ;;  %v232_v5 = vld [vmem:[#allocation2 + $0x298] sm:$0xff]  ;;  %v769_v35 = vld [vmem:[%s1240_s5 + $0xf0] sm:$0xff] }
  0xb8   :  { %658 = vmatpush.msra.mxu0 %v200_v36  ;;  %678 = vmatpush.msra.mxu1 %v264_v37  ;;  %v308_v6 = vld [vmem:[#allocation2 + $0x4f8] sm:$0xff] }
  0xb9   :  { %695 = vmatpush.msra.mxu2 %v340_v38  ;;  %715 = vmatpush.msra.mxu3 %v404_v39  ;;  %v372_v7 = vld [vmem:[#allocation2 + $0x6f8] sm:$0xff]  ;;  %v749_v39 = vld [vmem:[%s1240_s5 + $0x50] sm:$0xff] }
  0xba   :  { %659 = vmatpush.msra.mxu0 %v196_v40  ;;  %679 = vmatpush.msra.mxu1 %v260_v41  ;;  %v164_v8 = vld [vmem:[#allocation2 + $0x78] sm:$0xff]  ;;  %v747_v40 = vld [vmem:[%s1240_s5 + $0x40] sm:$0xff] }
  0xbb   :  { %696 = vmatpush.msra.mxu2 %v336_v42  ;;  %716 = vmatpush.msra.mxu3 %v400_v43  ;;  %v228_v9 = vld [vmem:[#allocation2 + $0x278] sm:$0xff]  ;;  %v767_v41 = vld [vmem:[%s1240_s5 + $0xe0] sm:$0xff] }
  0xbc   :  { %660 = vmatpush.msra.mxu0 %v192_v44  ;;  %680 = vmatpush.msra.mxu1 %v256_v45  ;;  %v304_v10 = vld [vmem:[#allocation2 + $0x4d8] sm:$0xff]  ;;  %v745_v44 = vld [vmem:[%s1240_s5 + $0x30] sm:$0xff] }
  0xbd   :  { %697 = vmatpush.msra.mxu2 %v332_v46  ;;  %717 = vmatpush.msra.mxu3 %v396_v47  ;;  %v368_v11 = vld [vmem:[#allocation2 + $0x6d8] sm:$0xff]  ;;  %v765_v45 = vld [vmem:[%s1240_s5 + $0xd0] sm:$0xff]  ;;  %v744_v46 = vld [vmem:[%s1240_s5 + $0x28] sm:$0xff] }
  0xbe   :  { %661 = vmatpush.msra.mxu0 %v188_v48  ;;  %681 = vmatpush.msra.mxu1 %v252_v49  ;;  %v160_v12 = vld [vmem:[#allocation2 + $0x58] sm:$0xff]  ;;  %v764_v47 = vld [vmem:[%s1240_s5 + $0xc8] sm:$0xff]  ;;  %v743_v48 = vld [vmem:[%s1240_s5 + $0x20] sm:$0xff] }
  0xbf   :  { %698 = vmatpush.msra.mxu2 %v328_v50  ;;  %718 = vmatpush.msra.mxu3 %v392_v51  ;;  %v224_v13 = vld [vmem:[#allocation2 + $0x258] sm:$0xff]  ;;  %v763_v49 = vld [vmem:[%s1240_s5 + $0xc0] sm:$0xff] }
  0xc0   :  { %662 = vmatpush.msra.mxu0 %v184_v52  ;;  %682 = vmatpush.msra.mxu1 %v248_v53  ;;  %v300_v14 = vld [vmem:[#allocation2 + $0x4b8] sm:$0xff]  ;;  %v741_v52 = vld [vmem:[%s1240_s5 + $0x10] sm:$0xff] }
  0xc1   :  { %699 = vmatpush.msra.mxu2 %v324_v54  ;;  %719 = vmatpush.msra.mxu3 %v388_v55  ;;  %v364_v15 = vld [vmem:[#allocation2 + $0x6b8] sm:$0xff]  ;;  %v761_v53 = vld [vmem:[%s1240_s5 + $0xb0] sm:$0xff]  ;;  %v740_v54 = vld [vmem:[%s1240_s5 + $0x8] sm:$0xff] }
  0xc2   :  { %663 = vmatpush.msra.mxu0 %v180_v56  ;;  %683 = vmatpush.msra.mxu1 %v244_v57  ;;  %v156_v18 = vld [vmem:[#allocation2 + $0x38] sm:$0xff]  ;;  %v760_v55 = vld [vmem:[%s1240_s5 + $0xa8] sm:$0xff]  ;;  %v739_v57 = vld [vmem:[%s1240_s5] sm:$0xff] }
  0xc3   :  { %700 = vmatpush.msra.mxu2 %v320_v58  ;;  %720 = vmatpush.msra.mxu3 %v384_v59  ;;  %v220_v19 = vld [vmem:[#allocation2 + $0x238] sm:$0xff]  ;;  %v759_v58 = vld [vmem:[%s1240_s5 + $0xa0] sm:$0xff] }
  0xc4   :  { %664 = vmatpush.msra.mxu0 %v176_v60  ;;  %684 = vmatpush.msra.mxu1 %v240_v61  ;;  %v296_v20 = vld [vmem:[#allocation2 + $0x498] sm:$0xff]  ;;  %v785_v60 = vld [vmem:[%s1240_s5 + $0x170] sm:$0xff] }
  0xc5   :  { %701 = vmatpush.msra.mxu2 %v316_v62  ;;  %721 = vmatpush.msra.mxu3 %v380_v63  ;;  %v360_v21 = vld [vmem:[#allocation2 + $0x698] sm:$0xff]  ;;  %v757_v61 = vld [vmem:[%s1240_s5 + $0x90] sm:$0xff]  ;;  %v784_v62 = vld [vmem:[%s1240_s5 + $0x168] sm:$0xff] }
  0xc6   :  { %665 = vmatpush.msra.mxu0 %v172_v0  ;;  %685 = vmatpush.msra.mxu1 %v236_v1  ;;  %v152_v22 = vld [vmem:[#allocation2 + $0x18] sm:$0xff]  ;;  %v756_v63 = vld [vmem:[%s1240_s5 + $0x88] sm:$0xff]  ;;  %v783_v0 = vld [vmem:[%s1240_s5 + $0x160] sm:$0xff] }
  0xc7   :  { %702 = vmatpush.msra.mxu2 %v312_v2  ;;  %722 = vmatpush.msra.mxu3 %v376_v3  ;;  %v216_v23 = vld [vmem:[#allocation2 + $0x218] sm:$0xff]  ;;  %v1136_v1 = vld [vmem:[%s1239_s4] sm:$0xf] }
  0xc8   :  { %666 = vmatpush.msra.mxu0 %v168_v4  ;;  %686 = vmatpush.msra.mxu1 %v232_v5  ;;  %v292_v24 = vld [vmem:[#allocation2 + $0x478] sm:$0xff]  ;;  %v755_v2 = vld [vmem:[%s1240_s5 + $0x80] sm:$0xff]  ;;  %v407_v4 = vperm.slane %v1136_v1, 0  ;;  %v781_v5 = vld [vmem:[%s1240_s5 + $0x150] sm:$0xff] }
  0xc9   :  { %703 = vmatpush.msra.mxu2 %v308_v6  ;;  %723 = vmatpush.msra.mxu3 %v372_v7  ;;  %v356_v25 = vld [vmem:[#allocation2 + $0x678] sm:$0xff] }
  0xca   :  { %667 = vmatpush.msra.mxu0 %v164_v8  ;;  %687 = vmatpush.msra.mxu1 %v228_v9  ;;  %v288_v26 = vld [vmem:[#allocation2 + $0x458] sm:$0xff]  ;;  %v780_v8 = vld [vmem:[%s1240_s5 + $0x148] sm:$0xff]  ;;  %v779_v9 = vld [vmem:[%s1240_s5 + $0x140] sm:$0xff] }
  0xcb   :  { %704 = vmatpush.msra.mxu2 %v304_v10  ;;  %724 = vmatpush.msra.mxu3 %v368_v11  ;;  %v352_v27 = vld [vmem:[#allocation2 + $0x658] sm:$0xff] }
  0xcc   :  { %668 = vmatpush.msra.mxu0 %v160_v12  ;;  %688 = vmatpush.msra.mxu1 %v224_v13  ;;  %v754_v28 = vld [vmem:[%s1240_s5 + $0x78] sm:$0xff]  ;;  %v777_v13 = vld [vmem:[%s1240_s5 + $0x130] sm:$0xff] }
  0xcd   :  { %705 = vmatpush.msra.mxu2 %v300_v14  ;;  %725 = vmatpush.msra.mxu3 %v364_v15  ;;  %v770_v29 = vld [vmem:[%s1240_s5 + $0xf8] sm:$0xff]  ;;  %v776_v14 = vld [vmem:[%s1240_s5 + $0x128] sm:$0xff] }
  0xce   :  { %669 = vmatpush.msra.mxu0 %v156_v18  ;;  %689 = vmatpush.msra.mxu1 %v220_v19  ;;  %v284_v32 = vld [vmem:[#allocation2 + $0x438] sm:$0xff]  ;;  %v408_v18 = vperm.slane %v1136_v1, 1 }
  0xcf   :  { %706 = vmatpush.msra.mxu2 %v296_v20  ;;  %726 = vmatpush.msra.mxu3 %v360_v21  ;;  %v348_v33 = vld [vmem:[#allocation2 + $0x638] sm:$0xff]  ;;  %v775_v20 = vld [vmem:[%s1240_s5 + $0x120] sm:$0xff] }
  0xd0   :  { %670 = vmatpush.msra.mxu0 %v152_v22  ;;  %690 = vmatpush.msra.mxu1 %v216_v23  ;;  %v280_v36 = vld [vmem:[#allocation2 + $0x418] sm:$0xff] }
  0xd1   :  { %707 = vmatpush.msra.mxu2 %v292_v24  ;;  %727 = vmatpush.msra.mxu3 %v356_v25  ;;  %v344_v37 = vld [vmem:[#allocation2 + $0x618] sm:$0xff] }
  0xd2   :  { %671 = vmatmul.f32.vlgmr.msra.gmra.mxu0 %v1004_v16  ;;  %691 = vmatmul.f32.vlgmr.msra.gmra.mxu1 %v1006_v17  ;;  %v752_v16 = vld [vmem:[%s1240_s5 + $0x68] sm:$0xff]  ;;  %v751_v17 = vld [vmem:[%s1240_s5 + $0x60] sm:$0xff]  ;;  %v750_v38 = vld [vmem:[%s1240_s5 + $0x58] sm:$0xff] }
  0xd3   :  { %708 = vmatpush.msra.mxu2 %v288_v26  ;;  %728 = vmatpush.msra.mxu3 %v352_v27  ;;  %v746_v42 = vld [vmem:[%s1240_s5 + $0x38] sm:$0xff] }
  0xd4   :  { %807 = vmatpush.msrb.mxu0 %v754_v28  ;;  %827 = vmatpush.msrb.mxu1 %v770_v29  ;;  %v766_v43 = vld [vmem:[%s1240_s5 + $0xd8] sm:$0xff]  ;;  %v773_v28 = vld [vmem:[%s1240_s5 + $0x110] sm:$0xff] }
  0xd5   :  { %709 = vmatpush.msra.mxu2 %v284_v32  ;;  %729 = vmatpush.msra.mxu3 %v348_v33  ;;  %v742_v50 = vld [vmem:[%s1240_s5 + $0x18] sm:$0xff]  ;;  %v772_v32 = vld [vmem:[%s1240_s5 + $0x108] sm:$0xff]  ;;  %v771_v33 = vld [vmem:[%s1240_s5 + $0x100] sm:$0xff] }
  0xd6   :  { %808 = vmatpush.msrb.mxu0 %v753_v34  ;;  %828 = vmatpush.msrb.mxu1 %v769_v35  ;;  %v762_v51 = vld [vmem:[%s1240_s5 + $0xb8] sm:$0xff] }
  0xd7   :  { %710 = vmatpush.msra.mxu2 %v280_v36  ;;  %730 = vmatpush.msra.mxu3 %v344_v37  ;;  %v786_v56 = vld [vmem:[%s1240_s5 + $0x178] sm:$0xff]  ;;  %v801_v37 = vld [vmem:[%s1240_s5 + $0x1f0] sm:$0xff] }
  0xd8   :  { %711 = vmatmul.f32.vlgmr.msra.gmra.mxu2 %v1010_v30  ;;  %731 = vmatmul.f32.vlgmr.msra.gmra.mxu3 %v1012_v31  ;;  %v748_v30 = vld [vmem:[%s1240_s5 + $0x48] sm:$0xff]  ;;  %v758_v59 = vld [vmem:[%s1240_s5 + $0x98] sm:$0xff] }
  0xd9   :  { %809 = vmatpush.msrb.mxu0 %v752_v16  ;;  %v768_v31 = vld [vmem:[%s1240_s5 + $0xe8] sm:$0xff]  ;;  %847 = vmatpush.msrb.mxu2 %v786_v56  ;;  %v782_v3 = vld [vmem:[%s1240_s5 + $0x158] sm:$0xff]  ;;  %v789_v56 = vld [vmem:[%s1240_s5 + $0x190] sm:$0xff] }
  0xda   :  { %829 = vmatpush.msrb.mxu1 %v768_v31  ;;  %v778_v10 = vld [vmem:[%s1240_s5 + $0x138] sm:$0xff] }
  0xdb   :  { %810 = vmatpush.msrb.mxu0 %v751_v17  ;;  %848 = vmatpush.msrb.mxu2 %v785_v60  ;;  %v774_v26 = vld [vmem:[%s1240_s5 + $0x118] sm:$0xff]  ;;  %v787_v60 = vld [vmem:[%s1240_s5 + $0x180] sm:$0xff] }
  0xdc   :  { %830 = vmatpush.msrb.mxu1 %v767_v41  ;;  %v802_v36 = vld [vmem:[%s1240_s5 + $0x1f8] sm:$0xff]  ;;  %v796_v41 = vld [vmem:[%s1240_s5 + $0x1c8] sm:$0xff] }
  0xdd   :  { %811 = vmatpush.msrb.mxu0 %v750_v38  ;;  %849 = vmatpush.msrb.mxu2 %v784_v62  ;;  %v800_v38 = vld [vmem:[%s1240_s5 + $0x1e8] sm:$0xff]  ;;  %v798_v31 = vld [vmem:[%s1240_s5 + $0x1d8] sm:$0xff] }
  0xde   :  { %831 = vmatpush.msrb.mxu1 %v766_v43  ;;  %867 = vmatpush.msrb.mxu3 %v802_v36  ;;  %v409_v43 = vperm.slane %v1136_v1, 2 }
  0xdf   :  { %812 = vmatpush.msrb.mxu0 %v749_v39  ;;  %850 = vmatpush.msrb.mxu2 %v783_v0 }
  0xe0   :  { %832 = vmatpush.msrb.mxu1 %v765_v45  ;;  %868 = vmatpush.msrb.mxu3 %v801_v37  ;;  %v794_v45 = vld [vmem:[%s1240_s5 + $0x1b8] sm:$0xff] }
  0xe1   :  { %813 = vmatpush.msrb.mxu0 %v748_v30  ;;  %851 = vmatpush.msrb.mxu2 %v782_v3  ;;  %v799_v30 = vld [vmem:[%s1240_s5 + $0x1e0] sm:$0xff] }
  0xe2   :  { %833 = vmatpush.msrb.mxu1 %v764_v47  ;;  %869 = vmatpush.msrb.mxu3 %v800_v38  ;;  %v792_v47 = vld [vmem:[%s1240_s5 + $0x1a8] sm:$0xff] }
  0xe3   :  { %814 = vmatpush.msrb.mxu0 %v747_v40  ;;  %852 = vmatpush.msrb.mxu2 %v781_v5  ;;  %v797_v40 = vld [vmem:[%s1240_s5 + $0x1d0] sm:$0xff] }
  0xe4   :  { %834 = vmatpush.msrb.mxu1 %v763_v49  ;;  %870 = vmatpush.msrb.mxu3 %v799_v30  ;;  %v791_v49 = vld [vmem:[%s1240_s5 + $0x1a0] sm:$0xff] }
  0xe5   :  { %815 = vmatpush.msrb.mxu0 %v746_v42  ;;  %853 = vmatpush.msrb.mxu2 %v780_v8  ;;  %v795_v42 = vld [vmem:[%s1240_s5 + $0x1c0] sm:$0xff] }
  0xe6   :  { %835 = vmatpush.msrb.mxu1 %v762_v51  ;;  %871 = vmatpush.msrb.mxu3 %v798_v31  ;;  %v901_v8 = vld [vmem:[%s1241_s6] ss:$0 sm:$0xff] }
  0xe7   :  { %816 = vmatpush.msrb.mxu0 %v745_v44  ;;  %854 = vmatpush.msrb.mxu2 %v779_v9 }
  0xe8   :  { %836 = vmatpush.msrb.mxu1 %v761_v53  ;;  %872 = vmatpush.msrb.mxu3 %v797_v40  ;;  %v790_v53 = vld [vmem:[%s1240_s5 + $0x198] sm:$0xff] }
  0xe9   :  { %817 = vmatpush.msrb.mxu0 %v744_v46  ;;  %855 = vmatpush.msrb.mxu2 %v778_v10  ;;  %v793_v46 = vld [vmem:[%s1240_s5 + $0x1b0] sm:$0xff] }
  0xea   :  { %837 = vmatpush.msrb.mxu1 %v760_v55  ;;  %873 = vmatpush.msrb.mxu3 %v796_v41 }
  0xeb   :  { %818 = vmatpush.msrb.mxu0 %v743_v48  ;;  %856 = vmatpush.msrb.mxu2 %v777_v13 }
  0xec   :  { %838 = vmatpush.msrb.mxu1 %v759_v58  ;;  %874 = vmatpush.msrb.mxu3 %v795_v42  ;;  %v788_v58 = vld [vmem:[%s1240_s5 + $0x188] sm:$0xff] }
  0xed   :  { %819 = vmatpush.msrb.mxu0 %v742_v50  ;;  %857 = vmatpush.msrb.mxu2 %v776_v14 }
  0xee   :  { %839 = vmatpush.msrb.mxu1 %v758_v59  ;;  %875 = vmatpush.msrb.mxu3 %v794_v45 }
  0xef   :  { %820 = vmatpush.msrb.mxu0 %v741_v52  ;;  %858 = vmatpush.msrb.mxu2 %v775_v20 }
  0xf0   :  { %840 = vmatpush.msrb.mxu1 %v757_v61  ;;  %876 = vmatpush.msrb.mxu3 %v793_v46  ;;  %v410_v61 = vperm.slane %v1136_v1, 3 }
  0xf1   :  { %821 = vmatpush.msrb.mxu0 %v740_v54  ;;  %859 = vmatpush.msrb.mxu2 %v774_v26 }
  0xf2   :  { %841 = vmatpush.msrb.mxu1 %v756_v63  ;;  %877 = vmatpush.msrb.mxu3 %v792_v47 }
  0xf3   :  { %822 = vmatpush.msrb.mxu0 %v739_v57  ;;  %860 = vmatpush.msrb.mxu2 %v773_v28 }
  0xf4   :  { %842 = vmatpush.msrb.mxu1 %v755_v2  ;;  %878 = vmatpush.msrb.mxu3 %v791_v49 }
  0xf5   :  { %861 = vmatpush.msrb.mxu2 %v772_v32 }
  0xf6   :  { %879 = vmatpush.msrb.mxu3 %v790_v53 }
  0xf7   :  { %862 = vmatpush.msrb.mxu2 %v771_v33 }
  0xf8   :  { %880 = vmatpush.msrb.mxu3 %v789_v56 }
  0xfa   :  { %881 = vmatpush.msrb.mxu3 %v788_v58 }
  0xfc   :  { %882 = vmatpush.msrb.mxu3 %v787_v60 }
 0x109   :  { %v432_v6 = vpop.f32.mrf.mxu0  ;;  %v452_v11 = vpop.f32.mrf.mxu1 }
 0x10a   :  { %v433_v7 = vadd.f32 %v432_v6, %v407_v4 }
 0x10c   :  { %v453_v12 = vadd.f32 %v452_v11, %v433_v7 }
 0x113   :  { %v512_v21 = vpop.f32.mrf.mxu0 }
 0x114   :  { %v513_v24 = vadd.f32 %v512_v21, %v408_v18 }
 0x115   :  { %v532_v27 = vpop.f32.mrf.mxu1 }
 0x116   :  { %v472_v15 = vpop.f32.mrf.mxu2  ;;  %v492_v22 = vpop.f32.mrf.mxu3  ;;  %v533_v29 = vadd.f32 %v532_v27, %v513_v24 }
 0x117   :  { %v473_v19 = vadd.f32 %v472_v15, %v453_v12 }
 0x119   :  { %v493_v23 = vadd.f32 %v492_v22, %v473_v19 }
 0x11b   :  { %v735_v25 = vmax.f32 %v493_v23, 0.0 }
 0x11d   :  { %823 = vmatmul.f32.vlgmr.msrb.gmra.mxu0 %v735_v25 }
 0x120   :  { %v552_v34 = vpop.f32.mrf.mxu2  ;;  %v572_v16 = vpop.f32.mrf.mxu3 }
 0x121   :  { %v553_v35 = vadd.f32 %v552_v34, %v533_v29 }
 0x123   :  { %v573_v17 = vadd.f32 %v572_v16, %v553_v35 }
 0x125   :  { %v736_v39 = vmax.f32 %v573_v17, 0.0 }
 0x127   :  { %843 = vmatmul.f32.vlgmr.msrb.gmra.mxu1 %v736_v39 }
 0x12d   :  { %v592_v44 = vpop.f32.mrf.mxu0  ;;  %v612_v50 = vpop.f32.mrf.mxu1 }
 0x12e   :  { %v593_v48 = vadd.f32 %v592_v44, %v409_v43 }
 0x130   :  { %v613_v51 = vadd.f32 %v612_v50, %v593_v48 }
 0x13a   :  { %v632_v52 = vpop.f32.mrf.mxu2  ;;  %v652_v55 = vpop.f32.mrf.mxu3 }
 0x13b   :  { %v633_v54 = vadd.f32 %v632_v52, %v613_v51 }
 0x13d   :  { %v653_v57 = vadd.f32 %v652_v55, %v633_v54 }
 0x13f   :  { %v737_v59 = vmax.f32 %v653_v57, 0.0 }
 0x141   :  { %863 = vmatmul.f32.vlgmr.msrb.gmra.mxu2 %v737_v59 }
 0x14f   :  { %v672_v62 = vpop.f32.mrf.mxu0  ;;  %v692_v0 = vpop.f32.mrf.mxu1 }
 0x150   :  { %v673_v63 = vadd.f32 %v672_v62, %v410_v61 }
 0x152   :  { %v693_v2 = vadd.f32 %v692_v0, %v673_v63 }
 0x15b   :  { %v712_v3 = vpop.f32.mrf.mxu2  ;;  %v732_v5 = vpop.f32.mrf.mxu3 }
 0x15c   :  { %v713_v4 = vadd.f32 %v712_v3, %v693_v2 }
 0x15e   :  { %v733_v6 = vadd.f32 %v732_v5, %v713_v4 }
 0x160   :  { %v738_v7 = vmax.f32 %v733_v6, 0.0 }
 0x162   :  { %883 = vmatmul.f32.vlgmr.msrb.gmra.mxu3 %v738_v7 }
 0x19a   :  { %v824_v9 = vpop.f32.mrf.mxu0 }
 0x19b   :  { %v825_v11 = vadd.f32 %v901_v8, %v824_v9 }
 0x1a4   :  { %v844_v10 = vpop.f32.mrf.mxu1 }
 0x1a5   :  { %v845_v13 = vadd.f32 %v844_v10, %v825_v11 }
 0x1c4   :  { %v864_v12 = vpop.f32.mrf.mxu2 }
 0x1c5   :  { %v865_v1 = vadd.f32 %v864_v12, %v845_v13 }
 0x1e5   :  { %v884_v14 = vpop.f32.mrf.mxu3 }
 0x1e6   :  { %v885_v15 = vadd.f32 %v884_v14, %v865_v1 }
 0x1e8   :  { %888 = vst.msk [vmem:[%s1242_s7] sm:$0xff] %vm887_vm1, %v885_v15 }
 0x1e9   :  { %893 = vsyncpa [#allocation3], 1 }

</bundles_post_ra>
